<compile_context>
chip_gen: v7x
topology: tpu7x:2x2x1
jax: 0.10.0
libtpu: 0.0.40
codegen_flags: <defaults>
</compile_context>

<pallas_src>
import jax
import jax.numpy as jnp
from jax.experimental import pallas as pl
from jax.experimental.pallas import tpu as pltpu

EPS = 1e-5

# MXU operand dtype (review item 2).  jnp.float32 keeps the 1e-3 fidelity vs.
# the f32 PyTorch reference; jnp.bfloat16 ~doubles MXU throughput at scale.
MATMUL_DTYPE = jnp.float32

# H-halo rows per image in the conv2 scratch.  16 is a multiple of both the
# f32 (8) and bf16 (16) sublane tiles, so every scratch STORE is tile-aligned
# (unmasked vst); only the two shifted READS are sublane-offset.
_PAD = 16


def _make_double_conv_kernel(N, H):
    """Kernel factory; N, H are static so the scratch layout is compile-time."""

    def kernel(lhs1_ref, t1_ref, t2_ref, g1_ref, bt1_ref, g2_ref, bt2_ref,
               s_ref, r_ref, o_ref, h1pad_ref):
        """Single-invocation kernel (whole problem is a few hundred KiB).

        Refs:
          lhs1_ref : (N*H, 3*W*Cin)          conv1 LHS, kh-major on lanes (MATMUL_DTYPE)
          t1_ref   : (3*W*Cin,  W*Cout)      banded conv1 weights (kh, kw, W-pad in K)
          t2_ref   : (3*W*Cout, W*Cout)      banded conv2 weights
          g*/bt*   : (1, Cout) f32           BatchNorm gamma / beta
          s_ref    : (W*Cout, Cout) f32      lane -> channel pooling matrix
          r_ref    : (Cout, W*Cout) f32      channel -> lane broadcast matrix (S^T)
          o_ref    : (N*H, W*Cout) f32       lane-dense output slab
          h1pad_ref: (N, H+2*_PAD, W*Cout)   scratch: per-image H-halo'd conv1 output
        """
        NH, WCo = o_ref.shape
        Cout = g1_ref.shape[-1]
        inv_cnt = 1.0 / (NH * (WCo // Cout))          # 1 / (N*H*W)

        def bn_relu(y, g_ref, b_ref):
            # Training-mode batch stats in one pass (biased variance).
            # Lane<->channel pooling/broadcast runs on the MXU; rsqrt on EUP.
            rowsum = jnp.sum(y, axis=0, keepdims=True)                # (1, W*Cout)
            rowsq = jnp.sum(y * y, axis=0, keepdims=True)             # (1, W*Cout)
            ch_sum = jnp.dot(rowsum, s_ref[...],
                             preferred_element_type=jnp.float32)      # (1, Cout)
            ch_sq = jnp.dot(rowsq, s_ref[...],
                            preferred_element_type=jnp.float32)       # (1, Cout)
            mean = ch_sum * inv_cnt
            var = ch_sq * inv_cnt - mean * mean
            scale_c = g_ref[...] * jax.lax.rsqrt(var + EPS)
            shift_c = b_ref[...] - mean * scale_c
            scale_l = jnp.dot(scale_c, r_ref[...],
                              preferred_element_type=jnp.float32)     # (1, W*Cout)
            shift_l = jnp.dot(shift_c, r_ref[...],
                              preferred_element_type=jnp.float32)     # (1, W*Cout)
            return jnp.maximum(y * scale_l + shift_l, 0.0)

        # ---- conv1: one MXU matmul, K = 3*W*Cin (kh taps + W padding folded
        # into the banded weight).  f32 accumulate; activations stay f32 on
        # the VPU (v5e has no bf16 VPU).
        y1 = jnp.dot(lhs1_ref[...], t1_ref[...],
                     preferred_element_type=jnp.float32)               # (N*H, W*Cout)
        h1 = bn_relu(y1, g1_ref, bt1_ref)

        # ---- conv2 LHS: single aligned scratch write of h1 + aligned zero
        # halo bands, two shifted (+-1 row) reads, lane-aligned concat.
        h1m = h1.astype(t2_ref.dtype)
        zband = jnp.zeros((N, _PAD, WCo), h1pad_ref.dtype)
        h1pad_ref[:, 0:_PAD, :] = zband                                # top halo (aligned)
        h1pad_ref[:, _PAD + H:_PAD + H + _PAD, :] = zband              # bottom halo (aligned)
        h1pad_ref[:, _PAD:_PAD + H, :] = h1m.reshape(N, H, WCo)        # interior (aligned)

        prev = h1pad_ref[:, _PAD - 1:_PAD - 1 + H, :].reshape(NH, WCo)   # row h-1
        nxt = h1pad_ref[:, _PAD + 1:_PAD + 1 + H, :].reshape(NH, WCo)    # row h+1
        lhs2 = jnp.concatenate([prev, h1m, nxt], axis=1)               # (N*H, 3*W*Cout)

        y2 = jnp.dot(lhs2, t2_ref[...], preferred_element_type=jnp.float32)
        # Lane-dense (N*H, W*Cout) output: full-width unmasked stores.
        o_ref[...] = bn_relu(y2, g2_ref, bt2_ref)

    return kernel


def _conv_band_matrix(w_hwio, W):
    """HWIO (3,3,Ci,Co) weights -> (3*W*Ci, W*Co) block-banded matrix.

    T[kh*W*Ci + wi*Ci + ci, wo*Co + co] = w[kh, wi-wo+1, ci, co] when
    wi-wo+1 in {0,1,2}, else 0 — i.e. the kh/kw taps and the 'same' zero
    padding along W are all folded into the K dimension of one matmul.
    """
    KH, KW, Ci, Co = w_hwio.shape
    wi = jnp.arange(W)[:, None]
    wo = jnp.arange(W)[None, :]
    m = jnp.stack([(wi == wo + kw - 1) for kw in range(KW)]).astype(jnp.float32)
    t = jnp.einsum('kab,hkio->haibo', m, w_hwio.astype(jnp.float32))
    return t.reshape(KH * W * Ci, W * Co)


def prepare_params(params, W):
    """One-time packing (hoisted out of the per-call path — review item 5)."""
    w1, b1, g1, bt1, w2, b2, g2, bt2 = params
    del b1, b2  # cancelled exactly by training-mode BN mean subtraction
    Cout = w1.shape[-1]
    s = jnp.tile(jnp.eye(Cout, dtype=jnp.float32), (W, 1))       # (W*Cout, Cout)
    return dict(
        t1=_conv_band_matrix(w1, W).astype(MATMUL_DTYPE),        # (3*W*Cin,  W*Cout)
        t2=_conv_band_matrix(w2, W).astype(MATMUL_DTYPE),        # (3*W*Cout, W*Cout)
        s=s, r=s.T,
        g1=g1.reshape(1, Cout).astype(jnp.float32),
        bt1=bt1.reshape(1, Cout).astype(jnp.float32),
        g2=g2.reshape(1, Cout).astype(jnp.float32),
        bt2=bt2.reshape(1, Cout).astype(jnp.float32),
    )


def double_conv_forward_nhwc(x_nhwc, pack):
    """NHWC in / NHWC out — use this entry point to skip both transposes."""
    N, H, W, Cin = x_nhwc.shape
    Cout = pack["g1"].shape[-1]
    WCo = W * Cout

    # conv1 im2col over kh only: (N*H, 3*W*Cin), kh-major on the lane axis.
    # TODO(synk): at real sizes build this inside the kernel per row-tile
    #             instead of materializing the 3x input slab in HBM.
    xp = jnp.pad(x_nhwc.astype(jnp.float32), ((0, 0), (1, 1), (0, 0), (0, 0)))
    lhs1 = jnp.concatenate(
        [xp[:, kh:kh + H].reshape(N, H, W * Cin) for kh in range(3)], axis=-1
    ).reshape(N * H, 3 * W * Cin).astype(MATMUL_DTYPE)

    mmi = jnp.dtype(MATMUL_DTYPE).itemsize
    flops = 2 * N * H * WCo * (3 * W * Cin + 3 * WCo)
    bytes_accessed = (lhs1.size * mmi + pack["t1"].size * mmi + pack["t2"].size * mmi
                      + pack["s"].size * 4 + pack["r"].size * 4
                      + 4 * Cout * 4 + N * H * WCo * 4)

    vmem = pl.BlockSpec(memory_space=pltpu.MemorySpace.VMEM)
    out = pl.pallas_call(
        _make_double_conv_kernel(N, H),
        out_shape=jax.ShapeDtypeStruct((N * H, WCo), jnp.float32),
        in_specs=[vmem] * 9,
        out_specs=vmem,
        scratch_shapes=[pltpu.VMEM((N, H + 2 * _PAD, WCo), MATMUL_DTYPE)],
        cost_estimate=pl.CostEstimate(flops=flops, transcendentals=2 * Cout,
                                      bytes_accessed=bytes_accessed),
    )(lhs1, pack["t1"], pack["t2"], pack["g1"], pack["bt1"],
      pack["g2"], pack["bt2"], pack["s"], pack["r"])
    return out.reshape(N, H, W, Cout)


def double_conv_forward(x_nchw, pack):
    """NCHW in / NCHW out, matching the PyTorch module."""
    y = double_conv_forward_nhwc(jnp.transpose(x_nchw, (0, 2, 3, 1)), pack)
    return jnp.transpose(y, (0, 3, 1, 2))


def _reference(x_nchw, params):
    """Pure-JAX reference (same math, incl. the redundant conv bias)."""
    w1, b1, g1, bt1, w2, b2, g2, bt2 = params

    def conv(x, w, b):
        y = jax.lax.conv_general_dilated(
            x, w, window_strides=(1, 1), padding='SAME',
            dimension_numbers=('NHWC', 'HWIO', 'NHWC'))
        return y + b.reshape(1, 1, 1, -1)

    def bn_relu(y, g, bt):
        m = jnp.mean(y, axis=(0, 1, 2), keepdims=True)
        v = jnp.mean((y - m) ** 2, axis=(0, 1, 2), keepdims=True)
        z = (y - m) / jnp.sqrt(v + EPS) * g.reshape(1, 1, 1, -1) \
            + bt.reshape(1, 1, 1, -1)
        return jnp.maximum(z, 0.0)

    x = jnp.transpose(x_nchw, (0, 2, 3, 1)).astype(jnp.float32)
    h = bn_relu(conv(x, w1, b1), g1, bt1)
    h = bn_relu(conv(h, w2, b2), g2, bt2)
    return jnp.transpose(h, (0, 3, 1, 2))


if __name__ == "__main__":
    key = jax.random.PRNGKey(0)
    N, Cin, Cout, H, W = 2, 4, 8, 16, 16
    ks = jax.random.split(key, 9)

    x = jax.random.normal(ks[0], (N, Cin, H, W), jnp.float32)
    # Conv weights in HWIO (equivalent parameterization of PyTorch's OIHW).
    w1 = 0.1 * jax.random.normal(ks[1], (3, 3, Cin, Cout), jnp.float32)
    b1 = 0.1 * jax.random.normal(ks[2], (Cout,), jnp.float32)
    g1 = 1.0 + 0.1 * jax.random.normal(ks[3], (Cout,), jnp.float32)
    bt1 = 0.1 * jax.random.normal(ks[4], (Cout,), jnp.float32)
    w2 = 0.1 * jax.random.normal(ks[5], (3, 3, Cout, Cout), jnp.float32)
    b2 = 0.1 * jax.random.normal(ks[6], (Cout,), jnp.float32)
    g2 = 1.0 + 0.1 * jax.random.normal(ks[7], (Cout,), jnp.float32)
    bt2 = 0.1 * jax.random.normal(ks[8], (Cout,), jnp.float32)
    params = (w1, b1, g1, bt1, w2, b2, g2, bt2)

    # One-time packing (banded weights, BN params, pooling matrices), then a
    # jitted per-call path that only does pad/concat/transpose + the kernel.
    pack = prepare_params(params, W)
    fwd = jax.jit(double_conv_forward)

    out = jax.block_until_ready(fwd(x, pack))
    ref = jax.block_until_ready(_reference(x, params))

    assert out.shape == (N, Cout, H, W), out.shape
    err = float(jnp.max(jnp.abs(out - ref)))
    assert jnp.allclose(out, ref, rtol=1e-3, atol=1e-3), f"max abs err={err}"
    print("KERNEL_OK")
</pallas_src>

<mosaic_0001>
module attributes {stable_mosaic.version = 11 : i64} {
  func.func @kernel(%arg0: memref<32x192xf32, #tpu.memory_space<vmem>>, %arg1: memref<192x128xf32, #tpu.memory_space<vmem>>, %arg2: memref<384x128xf32, #tpu.memory_space<vmem>>, %arg3: memref<1x8xf32, #tpu.memory_space<vmem>>, %arg4: memref<1x8xf32, #tpu.memory_space<vmem>>, %arg5: memref<1x8xf32, #tpu.memory_space<vmem>>, %arg6: memref<1x8xf32, #tpu.memory_space<vmem>>, %arg7: memref<128x8xf32, #tpu.memory_space<vmem>>, %arg8: memref<8x128xf32, #tpu.memory_space<vmem>>, %arg9: memref<32x128xf32, #tpu.memory_space<vmem>>, %arg10: memref<2x48x128xf32, #tpu.memory_space<vmem>>) attributes {dimension_semantics = [], scalar_prefetch = 0 : i64, scratch_operands = 1 : i64, tpu.core_type = #tpu.core_type<tc>} {
    %c0 = arith.constant 0 : index
    %c0_0 = arith.constant 0 : index
    %0 = vector.load %arg0[%c0, %c0_0] : memref<32x192xf32, #tpu.memory_space<vmem>>, vector<32x192xf32>
    %c0_1 = arith.constant 0 : index
    %c0_2 = arith.constant 0 : index
    %1 = vector.load %arg1[%c0_1, %c0_2] : memref<192x128xf32, #tpu.memory_space<vmem>>, vector<192x128xf32>
    %cst = arith.constant dense<0.000000e+00> : vector<32x128xf32>
    %2 = tpu.matmul %0, %1, %cst {dimension_numbers = #tpu.dot_dimension_numbers<[1], [0], [0], [1], [0, 0, 1, 1], [], []>} : vector<32x192xf32>, vector<192x128xf32>, vector<32x128xf32> -> vector<32x128xf32>
    %cst_3 = arith.constant dense<0.000000e+00> : vector<128xf32>
    %3 = vector.multi_reduction <add>, %2, %cst_3 [0] : vector<32x128xf32> to vector<128xf32>
    %4 = vector.shape_cast %3 : vector<128xf32> to vector<1x128xf32>
    %5 = arith.mulf %2, %2 : vector<32x128xf32>
    %cst_4 = arith.constant dense<0.000000e+00> : vector<128xf32>
    %6 = vector.multi_reduction <add>, %5, %cst_4 [0] : vector<32x128xf32> to vector<128xf32>
    %7 = vector.shape_cast %6 : vector<128xf32> to vector<1x128xf32>
    %c0_5 = arith.constant 0 : index
    %c0_6 = arith.constant 0 : index
    %8 = vector.load %arg7[%c0_5, %c0_6] : memref<128x8xf32, #tpu.memory_space<vmem>>, vector<128x8xf32>
    %cst_7 = arith.constant dense<0.000000e+00> : vector<1x8xf32>
    %9 = tpu.matmul %4, %8, %cst_7 {dimension_numbers = #tpu.dot_dimension_numbers<[1], [0], [0], [1], [0, 0, 1, 1], [], []>} : vector<1x128xf32>, vector<128x8xf32>, vector<1x8xf32> -> vector<1x8xf32>
    %c0_8 = arith.constant 0 : index
    %c0_9 = arith.constant 0 : index
    %10 = vector.load %arg7[%c0_8, %c0_9] : memref<128x8xf32, #tpu.memory_space<vmem>>, vector<128x8xf32>
    %cst_10 = arith.constant dense<0.000000e+00> : vector<1x8xf32>
    %11 = tpu.matmul %7, %10, %cst_10 {dimension_numbers = #tpu.dot_dimension_numbers<[1], [0], [0], [1], [0, 0, 1, 1], [], []>} : vector<1x128xf32>, vector<128x8xf32>, vector<1x8xf32> -> vector<1x8xf32>
    %cst_11 = arith.constant 0.001953125 : f32
    %12 = vector.broadcast %cst_11 : f32 to vector<1x8xf32>
    %13 = arith.mulf %9, %12 : vector<1x8xf32>
    %cst_12 = arith.constant 0.001953125 : f32
    %14 = vector.broadcast %cst_12 : f32 to vector<1x8xf32>
    %15 = arith.mulf %11, %14 : vector<1x8xf32>
    %16 = arith.mulf %13, %13 : vector<1x8xf32>
    %17 = arith.subf %15, %16 : vector<1x8xf32>
    %c0_13 = arith.constant 0 : index
    %c0_14 = arith.constant 0 : index
    %18 = vector.load %arg3[%c0_13, %c0_14] : memref<1x8xf32, #tpu.memory_space<vmem>>, vector<1x8xf32>
    %cst_15 = arith.constant 9.99999974E-6 : f32
    %19 = vector.broadcast %cst_15 : f32 to vector<1x8xf32>
    %20 = arith.addf %17, %19 : vector<1x8xf32>
    %21 = math.rsqrt %20 : vector<1x8xf32>
    %22 = arith.mulf %18, %21 : vector<1x8xf32>
    %c0_16 = arith.constant 0 : index
    %c0_17 = arith.constant 0 : index
    %23 = vector.load %arg4[%c0_16, %c0_17] : memref<1x8xf32, #tpu.memory_space<vmem>>, vector<1x8xf32>
    %24 = arith.mulf %13, %22 : vector<1x8xf32>
    %25 = arith.subf %23, %24 : vector<1x8xf32>
    %c0_18 = arith.constant 0 : index
    %c0_19 = arith.constant 0 : index
    %26 = vector.load %arg8[%c0_18, %c0_19] : memref<8x128xf32, #tpu.memory_space<vmem>>, vector<8x128xf32>
    %cst_20 = arith.constant dense<0.000000e+00> : vector<1x128xf32>
    %27 = tpu.matmul %22, %26, %cst_20 {dimension_numbers = #tpu.dot_dimension_numbers<[1], [0], [0], [1], [0, 0, 1, 1], [], []>} : vector<1x8xf32>, vector<8x128xf32>, vector<1x128xf32> -> vector<1x128xf32>
    %c0_21 = arith.constant 0 : index
    %c0_22 = arith.constant 0 : index
    %28 = vector.load %arg8[%c0_21, %c0_22] : memref<8x128xf32, #tpu.memory_space<vmem>>, vector<8x128xf32>
    %cst_23 = arith.constant dense<0.000000e+00> : vector<1x128xf32>
    %29 = tpu.matmul %25, %28, %cst_23 {dimension_numbers = #tpu.dot_dimension_numbers<[1], [0], [0], [1], [0, 0, 1, 1], [], []>} : vector<1x8xf32>, vector<8x128xf32>, vector<1x128xf32> -> vector<1x128xf32>
    %30 = vector.broadcast %27 : vector<1x128xf32> to vector<32x128xf32>
    %31 = arith.mulf %2, %30 : vector<32x128xf32>
    %32 = vector.broadcast %29 : vector<1x128xf32> to vector<32x128xf32>
    %33 = arith.addf %31, %32 : vector<32x128xf32>
    %cst_24 = arith.constant 0.000000e+00 : f32
    %34 = vector.broadcast %cst_24 : f32 to vector<32x128xf32>
    %35 = arith.maximumf %33, %34 : vector<32x128xf32>
    %cst_25 = arith.constant 0.000000e+00 : f32
    %36 = vector.broadcast %cst_25 : f32 to vector<2x16x128xf32>
    %c0_26 = arith.constant 0 : index
    %c0_27 = arith.constant 0 : index
    %c0_28 = arith.constant 0 : index
    %37 = vector.load %arg10[%c0_26, %c0_27, %c0_28] : memref<2x48x128xf32, #tpu.memory_space<vmem>>, vector<2x16x128xf32>
    tpu.vector_store %arg10[%c0_26, %c0_27, %c0_28], %36 {strides = array<i32>} : memref<2x48x128xf32, #tpu.memory_space<vmem>>, vector<2x16x128xf32>,
    %c0_29 = arith.constant 0 : index
    %c32 = arith.constant 32 : index
    %c0_30 = arith.constant 0 : index
    %38 = vector.load %arg10[%c0_29, %c32, %c0_30] : memref<2x48x128xf32, #tpu.memory_space<vmem>>, vector<2x16x128xf32>
    tpu.vector_store %arg10[%c0_29, %c32, %c0_30], %36 {strides = array<i32>} : memref<2x48x128xf32, #tpu.memory_space<vmem>>, vector<2x16x128xf32>,
    %39 = vector.shape_cast %35 : vector<32x128xf32> to vector<2x16x128xf32>
    %c0_31 = arith.constant 0 : index
    %c16 = arith.constant 16 : index
    %c0_32 = arith.constant 0 : index
    %40 = vector.load %arg10[%c0_31, %c16, %c0_32] : memref<2x48x128xf32, #tpu.memory_space<vmem>>, vector<2x16x128xf32>
    tpu.vector_store %arg10[%c0_31, %c16, %c0_32], %39 {strides = array<i32>} : memref<2x48x128xf32, #tpu.memory_space<vmem>>, vector<2x16x128xf32>,
    %c0_33 = arith.constant 0 : index
    %c15 = arith.constant 15 : index
    %c0_34 = arith.constant 0 : index
    %41 = vector.load %arg10[%c0_33, %c15, %c0_34] : memref<2x48x128xf32, #tpu.memory_space<vmem>>, vector<2x16x128xf32>
    %42 = vector.shape_cast %41 : vector<2x16x128xf32> to vector<32x128xf32>
    %c0_35 = arith.constant 0 : index
    %c17 = arith.constant 17 : index
    %c0_36 = arith.constant 0 : index
    %43 = vector.load %arg10[%c0_35, %c17, %c0_36] : memref<2x48x128xf32, #tpu.memory_space<vmem>>, vector<2x16x128xf32>
    %44 = vector.shape_cast %43 : vector<2x16x128xf32> to vector<32x128xf32>
    %45 = tpu.concatenate %42, %35, %44 in 1 : vector<32x128xf32>, vector<32x128xf32>, vector<32x128xf32> -> vector<32x384xf32>
    %c0_37 = arith.constant 0 : index
    %c0_38 = arith.constant 0 : index
    %46 = vector.load %arg2[%c0_37, %c0_38] : memref<384x128xf32, #tpu.memory_space<vmem>>, vector<384x128xf32>
    %cst_39 = arith.constant dense<0.000000e+00> : vector<32x128xf32>
    %47 = tpu.matmul %45, %46, %cst_39 {dimension_numbers = #tpu.dot_dimension_numbers<[1], [0], [0], [1], [0, 0, 1, 1], [], []>} : vector<32x384xf32>, vector<384x128xf32>, vector<32x128xf32> -> vector<32x128xf32>
    %cst_40 = arith.constant dense<0.000000e+00> : vector<128xf32>
    %48 = vector.multi_reduction <add>, %47, %cst_40 [0] : vector<32x128xf32> to vector<128xf32>
    %49 = vector.shape_cast %48 : vector<128xf32> to vector<1x128xf32>
    %50 = arith.mulf %47, %47 : vector<32x128xf32>
    %cst_41 = arith.constant dense<0.000000e+00> : vector<128xf32>
    %51 = vector.multi_reduction <add>, %50, %cst_41 [0] : vector<32x128xf32> to vector<128xf32>
    %52 = vector.shape_cast %51 : vector<128xf32> to vector<1x128xf32>
    %c0_42 = arith.constant 0 : index
    %c0_43 = arith.constant 0 : index
    %53 = vector.load %arg7[%c0_42, %c0_43] : memref<128x8xf32, #tpu.memory_space<vmem>>, vector<128x8xf32>
    %cst_44 = arith.constant dense<0.000000e+00> : vector<1x8xf32>
    %54 = tpu.matmul %49, %53, %cst_44 {dimension_numbers = #tpu.dot_dimension_numbers<[1], [0], [0], [1], [0, 0, 1, 1], [], []>} : vector<1x128xf32>, vector<128x8xf32>, vector<1x8xf32> -> vector<1x8xf32>
    %c0_45 = arith.constant 0 : index
    %c0_46 = arith.constant 0 : index
    %55 = vector.load %arg7[%c0_45, %c0_46] : memref<128x8xf32, #tpu.memory_space<vmem>>, vector<128x8xf32>
    %cst_47 = arith.constant dense<0.000000e+00> : vector<1x8xf32>
    %56 = tpu.matmul %52, %55, %cst_47 {dimension_numbers = #tpu.dot_dimension_numbers<[1], [0], [0], [1], [0, 0, 1, 1], [], []>} : vector<1x128xf32>, vector<128x8xf32>, vector<1x8xf32> -> vector<1x8xf32>
    %cst_48 = arith.constant 0.001953125 : f32
    %57 = vector.broadcast %cst_48 : f32 to vector<1x8xf32>
    %58 = arith.mulf %54, %57 : vector<1x8xf32>
    %cst_49 = arith.constant 0.001953125 : f32
    %59 = vector.broadcast %cst_49 : f32 to vector<1x8xf32>
    %60 = arith.mulf %56, %59 : vector<1x8xf32>
    %61 = arith.mulf %58, %58 : vector<1x8xf32>
    %62 = arith.subf %60, %61 : vector<1x8xf32>
    %c0_50 = arith.constant 0 : index
    %c0_51 = arith.constant 0 : index
    %63 = vector.load %arg5[%c0_50, %c0_51] : memref<1x8xf32, #tpu.memory_space<vmem>>, vector<1x8xf32>
    %cst_52 = arith.constant 9.99999974E-6 : f32
    %64 = vector.broadcast %cst_52 : f32 to vector<1x8xf32>
    %65 = arith.addf %62, %64 : vector<1x8xf32>
    %66 = math.rsqrt %65 : vector<1x8xf32>
    %67 = arith.mulf %63, %66 : vector<1x8xf32>
    %c0_53 = arith.constant 0 : index
    %c0_54 = arith.constant 0 : index
    %68 = vector.load %arg6[%c0_53, %c0_54] : memref<1x8xf32, #tpu.memory_space<vmem>>, vector<1x8xf32>
    %69 = arith.mulf %58, %67 : vector<1x8xf32>
    %70 = arith.subf %68, %69 : vector<1x8xf32>
    %c0_55 = arith.constant 0 : index
    %c0_56 = arith.constant 0 : index
    %71 = vector.load %arg8[%c0_55, %c0_56] : memref<8x128xf32, #tpu.memory_space<vmem>>, vector<8x128xf32>
    %cst_57 = arith.constant dense<0.000000e+00> : vector<1x128xf32>
    %72 = tpu.matmul %67, %71, %cst_57 {dimension_numbers = #tpu.dot_dimension_numbers<[1], [0], [0], [1], [0, 0, 1, 1], [], []>} : vector<1x8xf32>, vector<8x128xf32>, vector<1x128xf32> -> vector<1x128xf32>
    %c0_58 = arith.constant 0 : index
    %c0_59 = arith.constant 0 : index
    %73 = vector.load %arg8[%c0_58, %c0_59] : memref<8x128xf32, #tpu.memory_space<vmem>>, vector<8x128xf32>
    %cst_60 = arith.constant dense<0.000000e+00> : vector<1x128xf32>
    %74 = tpu.matmul %70, %73, %cst_60 {dimension_numbers = #tpu.dot_dimension_numbers<[1], [0], [0], [1], [0, 0, 1, 1], [], []>} : vector<1x8xf32>, vector<8x128xf32>, vector<1x128xf32> -> vector<1x128xf32>
    %75 = vector.broadcast %72 : vector<1x128xf32> to vector<32x128xf32>
    %76 = arith.mulf %47, %75 : vector<32x128xf32>
    %77 = vector.broadcast %74 : vector<1x128xf32> to vector<32x128xf32>
    %78 = arith.addf %76, %77 : vector<32x128xf32>
    %cst_61 = arith.constant 0.000000e+00 : f32
    %79 = vector.broadcast %cst_61 : f32 to vector<32x128xf32>
    %80 = arith.maximumf %78, %79 : vector<32x128xf32>
    %c0_62 = arith.constant 0 : index
    %c0_63 = arith.constant 0 : index
    %81 = vector.load %arg9[%c0_62, %c0_63] : memref<32x128xf32, #tpu.memory_space<vmem>>, vector<32x128xf32>
    tpu.vector_store %arg9[%c0_62, %c0_63], %80 {strides = array<i32>} : memref<32x128xf32, #tpu.memory_space<vmem>>, vector<32x128xf32>,
    return
  }
}

</mosaic_0001>

<bundles_post_ra>
// kernel: double_conv_forward.1
= control target key start
LH: loop header
LB: loop body
LE: loop exit
PB: predicated region body
PF: predicated region fallthrough
CT: control target
= control target key end

     0   :  { %v1670_v0 = vmov 0.0|0.0   ;;  %vm64_vm0 = vcmask 523264   ;;  %vm1671_vm1 = vmmov 0   ;;  %vm352_vm2 = vcmask 64512   ;;  %s2204_s1 = inlined_call_operand.vmem [shape: f32[192,128], index: 1, kind: input, shape index: {}]   ;;  %s2205_s0 = inlined_call_operand.vmem [shape: f32[32,192], index: 0, kind: input, shape index: {}]   ;;  %s2206_s7 = inlined_call_operand.vmem [shape: f32[128,8], index: 7, kind: input, shape index: {}]   ;;  %s2207_s8 = inlined_call_operand.vmem [shape: f32[8,128], index: 8, kind: input, shape index: {}]   ;;  %s2208_s2 = inlined_call_operand.vmem [shape: f32[384,128], index: 2, kind: input, shape index: {}]   ;;  %s2209_s3 = inlined_call_operand.vmem [shape: f32[1,8], index: 3, kind: input, shape index: {}]   ;;  %s2210_s4 = inlined_call_operand.vmem [shape: f32[1,8], index: 4, kind: input, shape index: {}]   ;;  %s2211_s5 = inlined_call_operand.vmem [shape: f32[1,8], index: 5, kind: input, shape index: {}]   ;;  %s2212_s6 = inlined_call_operand.vmem [shape: f32[1,8], index: 6, kind: input, shape index: {}]   ;;  %s2213_s9 = inlined_call_operand.vmem [shape: f32[32,128], index: 9, kind: output, shape index: {}]  }
   0x1   :  { %1467 = vmatprep.subr.bf16.mxu0 %v1670_v0  ;;  %v40_v1 = vld [vmem:[%s2204_s1] sm:$0xff]  ;;  %v41_v2 = vld [vmem:[%s2204_s1 + $0x8] sm:$0xff]  ;;  %v42_v3 = vld [vmem:[%s2204_s1 + $0x10] sm:$0xff]  ;;  %1503 = vmatprep.subr.bf16.mxu1 %v1670_v0 }
   0x2   :  { %v1468_v4 = vpack.c.bf16 %v41_v2, %v40_v1  ;;  %v43_v5 = vld [vmem:[%s2204_s1 + $0x18] sm:$0xff]  ;;  %v44_v7 = vld [vmem:[%s2204_s1 + $0x20] sm:$0xff]  ;;  %v45_v8 = vld [vmem:[%s2204_s1 + $0x28] sm:$0xff] }
   0x3   :  { %v1471_v6 = vpack.c.bf16 %v43_v5, %v42_v3  ;;  %v1474_v9 = vpack.c.bf16 %v45_v8, %v44_v7  ;;  %v46_v10 = vld [vmem:[%s2204_s1 + $0x30] sm:$0xff]  ;;  %v47_v11 = vld [vmem:[%s2204_s1 + $0x38] sm:$0xff]  ;;  %v33_v12 = vld [vmem:[%s2205_s0 + $0x8] sm:$0xff] }
   0x4   :  { %1469 = vmatpush1.bf16.msra.mxu0 %v1468_v4  ;;  %1121 = vmatprep.mubr.msk.f32.mxu0 %vm64_vm0, %v33_v12  ;;  %v184_v13 = vld [vmem:[%s2206_s7] sm:$0xff]  ;;  %v1477_v14 = vpack.c.bf16 %v47_v11, %v46_v10  ;;  %v185_v15 = vld [vmem:[%s2206_s7 + $0x8] sm:$0xff]  ;;  %v186_v16 = vld [vmem:[%s2206_s7 + $0x10] sm:$0xff] }
   0x5   :  { %1470 = vmatprep.subr.bf16.mxu0 %v1670_v0  ;;  %v187_v17 = vld [vmem:[%s2206_s7 + $0x18] sm:$0xff]  ;;  %v48_v18 = vld [vmem:[%s2204_s1 + $0x40] sm:$0xff]  ;;  %v49_v19 = vld [vmem:[%s2204_s1 + $0x48] sm:$0xff]  ;;  %v1774_v20 = vpack.c.bf16 %v185_v15, %v184_v13 }
   0x6   :  { %v1777_v21 = vpack.c.bf16 %v187_v17, %v186_v16  ;;  %v1480_v22 = vpack.c.bf16 %v49_v19, %v48_v18  ;;  %v50_v23 = vld [vmem:[%s2204_s1 + $0x50] sm:$0xff]  ;;  %v51_v24 = vld [vmem:[%s2204_s1 + $0x58] sm:$0xff]  ;;  %v52_v26 = vld [vmem:[%s2204_s1 + $0x60] sm:$0xff] }
   0x7   :  { %1505 = vmatpush3.bf16.msra.mxu1 %v1774_v20  ;;  %v1483_v25 = vpack.c.bf16 %v51_v24, %v50_v23  ;;  %v53_v27 = vld [vmem:[%s2204_s1 + $0x68] sm:$0xff]  ;;  %v54_v29 = vld [vmem:[%s2204_s1 + $0x70] sm:$0xff]  ;;  %v55_v30 = vld [vmem:[%s2204_s1 + $0x78] sm:$0xff] }
   0x8   :  { %1472 = vmatpush1.bf16.msra.mxu0 %v1471_v6  ;;  %1506 = vmatprep.subr.bf16.mxu1 %v1670_v0  ;;  %v1486_v28 = vpack.c.bf16 %v53_v27, %v52_v26  ;;  %v1489_v31 = vpack.c.bf16 %v55_v30, %v54_v29  ;;  %v56_v32 = vld [vmem:[%s2204_s1 + $0x80] sm:$0xff]  ;;  %v57_v33 = vld [vmem:[%s2204_s1 + $0x88] sm:$0xff]  ;;  %v58_v35 = vld [vmem:[%s2204_s1 + $0x90] sm:$0xff]  ;;  %v1672_v6 = vmov 0.0  }
   0x9   :  { %1473 = vmatprep.subr.bf16.mxu0 %v1670_v0  ;;  %v1492_v34 = vpack.c.bf16 %v57_v33, %v56_v32  ;;  %v59_v36 = vld [vmem:[%s2204_s1 + $0x98] sm:$0xff]  ;;  %v60_v38 = vld [vmem:[%s2204_s1 + $0xa0] sm:$0xff]  ;;  %v61_v39 = vld [vmem:[%s2204_s1 + $0xa8] sm:$0xff]  ;;  %1301 = vmatprep.mubr.msk.f32.mxu1 %vm1671_vm1, %v1672_v6  ;;  %520 = vst [vmem:[#allocation2 + $0x8] sm:$0xff] %v1672_v6 }
   0xa   :  { %v1495_v37 = vpack.c.bf16 %v59_v36, %v58_v35  ;;  %v1498_v40 = vpack.c.bf16 %v61_v39, %v60_v38  ;;  %v62_v41 = vld [vmem:[%s2204_s1 + $0xb0] sm:$0xff]  ;;  %v63_v42 = vld [vmem:[%s2204_s1 + $0xb8] sm:$0xff]  ;;  %v32_v44 = vld [vmem:[%s2205_s0] sm:$0xff]  ;;  %522 = vst [vmem:[#allocation2 + $0x38] sm:$0xff] %v1672_v6 }
   0xb   :  { %1508 = vmatpush3.bf16.msra.mxu1 %v1777_v21  ;;  %v1501_v43 = vpack.c.bf16 %v63_v42, %v62_v41  ;;  %v35_v45 = vld [vmem:[%s2205_s0 + $0x18] sm:$0xff]  ;;  %v34_v46 = vld [vmem:[%s2205_s0 + $0x10] sm:$0xff]  ;;  %v37_v47 = vld [vmem:[%s2205_s0 + $0x28] sm:$0xff]  ;;  %523 = vst [vmem:[#allocation2 + $0x20] sm:$0xff] %v1672_v6 }
   0xc   :  { %1475 = vmatpush1.bf16.msra.mxu0 %v1474_v9  ;;  %1509 = vmatprep.subr.bf16.mxu1 %v1670_v0  ;;  %v36_v48 = vld [vmem:[%s2205_s0 + $0x20] sm:$0xff]  ;;  %v39_v49 = vld [vmem:[%s2205_s0 + $0x38] sm:$0xff]  ;;  %v38_v50 = vld [vmem:[%s2205_s0 + $0x30] sm:$0xff]  ;;  %525 = vst [vmem:[#allocation2 + $0x50] sm:$0xff] %v1672_v6 }
   0xd   :  { %1476 = vmatprep.subr.bf16.mxu0 %v1670_v0  ;;  %v188_v51 = vld [vmem:[%s2206_s7 + $0x20] sm:$0xff]  ;;  %v189_v52 = vld [vmem:[%s2206_s7 + $0x28] sm:$0xff]  ;;  %v190_v54 = vld [vmem:[%s2206_s7 + $0x30] sm:$0xff] }
   0xe   :  { %v1862_v53 = vpack.c.bf16 %v189_v52, %v188_v51  ;;  %v191_v55 = vld [vmem:[%s2206_s7 + $0x38] sm:$0xff]  ;;  %v192_v57 = vld [vmem:[%s2206_s7 + $0x40] sm:$0xff]  ;;  %v193_v58 = vld [vmem:[%s2206_s7 + $0x48] sm:$0xff] }
   0xf   :  { %v1872_v56 = vpack.c.bf16 %v191_v55, %v190_v54  ;;  %v1882_v59 = vpack.c.bf16 %v193_v58, %v192_v57  ;;  %v194_v60 = vld [vmem:[%s2206_s7 + $0x50] sm:$0xff]  ;;  %v195_v61 = vld [vmem:[%s2206_s7 + $0x58] sm:$0xff]  ;;  %v196_v63 = vld [vmem:[%s2206_s7 + $0x60] sm:$0xff] }
  0x10   :  { %1478 = vmatpush1.bf16.msra.mxu0 %v1477_v14  ;;  %1511 = vmatpush3.bf16.msra.mxu1 %v1862_v53  ;;  %v1892_v62 = vpack.c.bf16 %v195_v61, %v194_v60  ;;  %v197_v1 = vld [vmem:[%s2206_s7 + $0x68] sm:$0xff]  ;;  %v198_v3 = vld [vmem:[%s2206_s7 + $0x70] sm:$0xff]  ;;  %v199_v4 = vld [vmem:[%s2206_s7 + $0x78] sm:$0xff] }
  0x11   :  { %1479 = vmatprep.subr.bf16.mxu0 %v1670_v0  ;;  %1512 = vmatprep.subr.bf16.mxu1 %v1670_v0  ;;  %v1902_v2 = vpack.c.bf16 %v197_v1, %v196_v63  ;;  %v1912_v5 = vpack.c.bf16 %v199_v4, %v198_v3  ;;  %v1965_v39 = vld [vmem:[%s2207_s8] sm:$0xff]  ;;  %v556_v41 = vld [vmem:[%s2208_s2 + $0x88] sm:$0xff]  ;;  %v561_v61 = vld [vmem:[%s2208_s2 + $0xb0] sm:$0xff] }
  0x12   :  { %v539_v42 = vld [vmem:[%s2208_s2] sm:$0xff]  ;;  %v560_v54 = vld [vmem:[%s2208_s2 + $0xa8] sm:$0xff]  ;;  %v562_v63 = vld [vmem:[%s2208_s2 + $0xb8] sm:$0xff] }
  0x13   :  { %v559_v52 = vld [vmem:[%s2208_s2 + $0xa0] sm:$0xff]  ;;  %v544_v58 = vld [vmem:[%s2208_s2 + $0x28] sm:$0xff]  ;;  %v1563_v1 = vpack.c.bf16 %v562_v63, %v561_v61  ;;  %v582_v61 = vld [vmem:[%s2208_s2 + $0x158] sm:$0xff] }
  0x14   :  { %1481 = vmatpush1.bf16.msra.mxu0 %v1480_v22  ;;  %1514 = vmatpush3.bf16.msra.mxu1 %v1872_v56  ;;  %v1559_v55 = vpack.c.bf16 %v560_v54, %v559_v52  ;;  %v543_v57 = vld [vmem:[%s2208_s2 + $0x20] sm:$0xff]  ;;  %v566_v52 = vld [vmem:[%s2208_s2 + $0xd8] sm:$0xff] }
  0x15   :  { %1482 = vmatprep.subr.bf16.mxu0 %v1670_v0  ;;  %1515 = vmatprep.subr.bf16.mxu1 %v1670_v0  ;;  %v1561_v60 = vpack.c.bf16 %v544_v58, %v543_v57  ;;  %v550_v57 = vld [vmem:[%s2208_s2 + $0x58] sm:$0xff]  ;;  %v581_v58 = vld [vmem:[%s2208_s2 + $0x150] sm:$0xff] }
  0x16   :  { %v1603_v63 = vpack.c.bf16 %v582_v61, %v581_v58 }
  0x18   :  { %1484 = vmatpush1.bf16.msra.mxu0 %v1483_v25  ;;  %1517 = vmatpush3.bf16.msra.mxu1 %v1882_v59 }
  0x19   :  { %1485 = vmatprep.subr.bf16.mxu0 %v1670_v0  ;;  %1518 = vmatprep.subr.bf16.mxu1 %v1670_v0 }
  0x1c   :  { %1487 = vmatpush1.bf16.msra.mxu0 %v1486_v28  ;;  %1520 = vmatpush3.bf16.msra.mxu1 %v1892_v62 }
  0x1d   :  { %1488 = vmatprep.subr.bf16.mxu0 %v1670_v0  ;;  %1521 = vmatprep.subr.bf16.mxu1 %v1670_v0 }
  0x20   :  { %1490 = vmatpush1.bf16.msra.mxu0 %v1489_v31  ;;  %1523 = vmatpush3.bf16.msra.mxu1 %v1902_v2 }
  0x21   :  { %1491 = vmatprep.subr.bf16.mxu0 %v1670_v0  ;;  %1524 = vmatprep.subr.bf16.mxu1 %v1670_v0 }
  0x24   :  { %1493 = vmatpush1.bf16.msra.mxu0 %v1492_v34  ;;  %1526 = vmatpush3.bf16.msra.mxu1 %v1912_v5 }
  0x25   :  { %1494 = vmatprep.subr.bf16.mxu0 %v1670_v0  ;;  %1527 = vmatprep.subr.bf16.mxu1 %v1670_v0 }
  0x28   :  { %1496 = vmatpush1.bf16.msra.mxu0 %v1495_v37 }
  0x29   :  { %1497 = vmatprep.subr.bf16.mxu0 %v1670_v0 }
  0x2c   :  { %1499 = vmatpush1.bf16.msra.mxu0 %v1498_v40  ;;  %v555_v40 = vld [vmem:[%s2208_s2 + $0x80] sm:$0xff] }
  0x2d   :  { %1500 = vmatprep.subr.bf16.mxu0 %v1670_v0 }
  0x30   :  { %1502 = vmatpush1.bf16.msra.mxu0 %v1501_v43  ;;  %v1551_v43 = vpack.c.bf16 %v556_v41, %v555_v40  ;;  %v578_v40 = vld [vmem:[%s2208_s2 + $0x138] sm:$0xff] }
  0x31   :  { %1339 = vmatprep.subr.mxu0 %v1672_v6 }
  0x33   :  { %142 = vmatmul.mubr.f32.vlgmr.msra.gmra.mrb[0].mxu0 %v32_v44  ;;  %v540_v44 = vld [vmem:[%s2208_s2 + $0x8] sm:$0xff] }
  0x34   :  { %1122 = vmatprep.mubr.msk.f32.mxu0 %vm64_vm0, %v35_v45  ;;  %1340 = vmatpush3.msra.mxu0 %v1965_v39  ;;  %v1553_v45 = vpack.c.bf16 %v540_v44, %v539_v42  ;;  %v563_v42 = vld [vmem:[%s2208_s2 + $0xc0] sm:$0xff] }
  0x35   :  { %1344 = vmatprep.subr.mxu0 %v1672_v6 }
  0x37   :  { %147 = vmatmul.mubr.f32.gmra.mrb[2].mxu0 %v34_v46  ;;  %v557_v46 = vld [vmem:[%s2208_s2 + $0x90] sm:$0xff] }
  0x38   :  { %1123 = vmatprep.mubr.msk.f32.mxu0 %vm64_vm0, %v37_v47  ;;  %v558_v47 = vld [vmem:[%s2208_s2 + $0x98] sm:$0xff] }
  0x3b   :  { %152 = vmatmul.mubr.f32.gmra.mrb[4].mxu0 %v36_v48  ;;  %v541_v48 = vld [vmem:[%s2208_s2 + $0x10] sm:$0xff] }
  0x3c   :  { %1124 = vmatprep.mubr.msk.f32.mxu0 %vm64_vm0, %v39_v49  ;;  %v1555_v49 = vpack.c.bf16 %v558_v47, %v557_v46  ;;  %v548_v46 = vld [vmem:[%s2208_s2 + $0x48] sm:$0xff]  ;;  %v579_v47 = vld [vmem:[%s2208_s2 + $0x140] sm:$0xff] }
  0x3f   :  { %157 = vmatmul.mubr.f32.gmra.mrb[6].mxu0 %v38_v50  ;;  %v542_v50 = vld [vmem:[%s2208_s2 + $0x18] sm:$0xff] }
  0x40   :  { %1341 = vmatprep.mubr.msk.f32.mxu0 %vm1671_vm1, %v1672_v6  ;;  %v1557_v51 = vpack.c.bf16 %v542_v50, %v541_v48 }
 0x106   :  { %v1925_v7 = vpop.f32.mrb[0].mxu0 }
 0x107   :  { %v145_v8 = vpop.f32.mrb[1].mxu0  ;;  %v171_v10 = vmul.f32 %v1925_v7, %v1925_v7 }
 0x10a   :  { %v1927_v9 = vpop.f32.mrb[2].mxu0 }
 0x10b   :  { %v162_v11 = vadd.f32 %v1927_v9, %v1925_v7  ;;  %v172_v12 = vmul.f32 %v1927_v9, %v1927_v9  ;;  %v150_v13 = vpop.f32.mrb[3].mxu0 }
 0x10d   :  { %v175_v14 = vadd.f32 %v172_v12, %v171_v10 }
 0x10e   :  { %v1935_v15 = vpop.f32.mrb[4].mxu0 }
 0x10f   :  { %v163_v16 = vadd.f32 %v162_v11, %v1935_v15  ;;  %v173_v17 = vmul.f32 %v1935_v15, %v1935_v15  ;;  %v155_v18 = vpop.f32.mrb[5].mxu0 }
 0x110   :  { %v571_v18 = vld [vmem:[%s2208_s2 + $0x100] sm:$0xff] }
 0x111   :  { %v176_v19 = vadd.f32 %v175_v14, %v173_v17  ;;  %v344_v17 = vld [vmem:[%s2209_s3] sm:$0x1] }
 0x112   :  { %v1940_v22 = vpop.f32.mrb[6].mxu0 }
 0x113   :  { %v164_v23 = vadd.f32 %v163_v16, %v1940_v22  ;;  %v174_v24 = vmul.f32 %v1940_v22, %v1940_v22  ;;  %v160_v25 = vpop.f32.mrb[7].mxu0 }
 0x115   :  { %v165_v26 = vrot.slane %v164_v23, 4  ;;  %v177_v27 = vadd.f32 %v176_v19, %v174_v24  ;;  %v572_v19 = vld [vmem:[%s2208_s2 + $0x108] sm:$0xff] }
 0x116   :  { %v1583_v25 = vpack.c.bf16 %v572_v19, %v571_v18  ;;  %v553_v18 = vld [vmem:[%s2208_s2 + $0x70] sm:$0xff] }
 0x117   :  { %v166_v28 = vadd.f32 %v165_v26, %v164_v23  ;;  %v178_v33 = vrot.slane %v177_v27, 4  ;;  %v348_v26 = vld [vmem:[%s2210_s4] sm:$0x1] }
 0x119   :  { %v167_v29 = vrot.slane %v166_v28, 2  ;;  %v179_v34 = vadd.f32 %v178_v33, %v177_v27  ;;  %v573_v27 = vld [vmem:[%s2208_s2 + $0x110] sm:$0xff]  ;;  %v576_v33 = vld [vmem:[%s2208_s2 + $0x128] sm:$0xff] }
 0x11b   :  { %v168_v30 = vadd.f32 %v167_v29, %v166_v28  ;;  %v180_v35 = vrot.slane %v179_v34, 2  ;;  %v574_v28 = vld [vmem:[%s2208_s2 + $0x118] sm:$0xff] }
 0x11d   :  { %v169_v31 = vrot.slane %v168_v30, 1  ;;  %v181_v36 = vadd.f32 %v180_v35, %v179_v34  ;;  %v545_v35 = vld [vmem:[%s2208_s2 + $0x30] sm:$0xff] }
 0x11f   :  { %v170_v32 = vadd.f32 %v169_v31, %v168_v30  ;;  %v182_v37 = vrot.slane %v181_v36, 1  ;;  %v1587_v31 = vpack.c.bf16 %v574_v28, %v573_v27  ;;  %v499_v28 = vlaneseq }
 0x121   :  { %1302 = vmatmul.mubr.f32.vlgmr.msra.gmra.mrb[0].mxu1 %v170_v32  ;;  %v183_v38 = vadd.f32 %v182_v37, %v181_v36  ;;  %v575_v32 = vld [vmem:[%s2208_s2 + $0x120] sm:$0xff]  ;;  %v546_v36 = vld [vmem:[%s2208_s2 + $0x38] sm:$0xff]  ;;  %v577_v37 = vld [vmem:[%s2208_s2 + $0x130] sm:$0xff] }
 0x122   :  { %1529 = vmatpush3.bf16.msra.mxu1 %v1774_v20  ;;  %1336 = vmatprep.mubr.msk.f32.mxu1 %vm1671_vm1, %v1672_v6  ;;  %v1591_v34 = vpack.c.bf16 %v576_v33, %v575_v32  ;;  %v1595_v41 = vpack.c.bf16 %v578_v40, %v577_v37 }
 0x123   :  { %1530 = vmatprep.subr.bf16.mxu1 %v1670_v0 }
 0x126   :  { %1532 = vmatpush3.bf16.msra.mxu1 %v1777_v21 }
 0x127   :  { %1533 = vmatprep.subr.bf16.mxu1 %v1670_v0 }
 0x12a   :  { %1535 = vmatpush3.bf16.msra.mxu1 %v1862_v53 }
 0x12b   :  { %1536 = vmatprep.subr.bf16.mxu1 %v1670_v0 }
 0x12e   :  { %1538 = vmatpush3.bf16.msra.mxu1 %v1872_v56 }
 0x12f   :  { %1539 = vmatprep.subr.bf16.mxu1 %v1670_v0 }
 0x132   :  { %1541 = vmatpush3.bf16.msra.mxu1 %v1882_v59 }
 0x133   :  { %1542 = vmatprep.subr.bf16.mxu1 %v1670_v0 }
 0x136   :  { %1544 = vmatpush3.bf16.msra.mxu1 %v1892_v62 }
 0x137   :  { %1545 = vmatprep.subr.bf16.mxu1 %v1670_v0 }
 0x13a   :  { %1547 = vmatpush3.bf16.msra.mxu1 %v1902_v2 }
 0x13b   :  { %1548 = vmatprep.subr.bf16.mxu1 %v1670_v0 }
 0x13e   :  { %1550 = vmatpush3.bf16.msra.mxu1 %v1912_v5 }
 0x13f   :  { %1552 = vmatprep.subr.bf16.mxu1 %v1551_v43  ;;  %v564_v43 = vld [vmem:[%s2208_s2 + $0xc8] sm:$0xff] }
 0x140   :  { %v1567_v44 = vpack.c.bf16 %v564_v43, %v563_v42 }
 0x141   :  { %1337 = vmatmul.mubr.f32.vlgmr.msra.gmra.mrb[2].mxu1 %v183_v38  ;;  %v1565_v38 = vpack.c.bf16 %v546_v36, %v545_v35 }
 0x142   :  { %1554 = vmatpush3.bf16.msra.mxu1 %v1553_v45  ;;  %v547_v45 = vld [vmem:[%s2208_s2 + $0x40] sm:$0xff] }
 0x143   :  { %1556 = vmatprep.subr.bf16.mxu1 %v1555_v49  ;;  %v1569_v48 = vpack.c.bf16 %v548_v46, %v547_v45  ;;  %v580_v49 = vld [vmem:[%s2208_s2 + $0x148] sm:$0xff] }
 0x144   :  { %v1599_v50 = vpack.c.bf16 %v580_v49, %v579_v47 }
 0x146   :  { %1558 = vmatpush3.bf16.msra.mxu1 %v1557_v51  ;;  %v565_v51 = vld [vmem:[%s2208_s2 + $0xd0] sm:$0xff] }
 0x147   :  { %1560 = vmatprep.subr.bf16.mxu1 %v1559_v55  ;;  %v1571_v54 = vpack.c.bf16 %v566_v52, %v565_v51  ;;  %v549_v55 = vld [vmem:[%s2208_s2 + $0x50] sm:$0xff] }
 0x14a   :  { %1562 = vmatpush3.bf16.msra.mxu1 %v1561_v60  ;;  %v1573_v60 = vpack.c.bf16 %v550_v57, %v549_v55 }
 0x14b   :  { %1564 = vmatprep.subr.bf16.mxu1 %v1563_v1  ;;  %v567_v1 = vld [vmem:[%s2208_s2 + $0xe0] sm:$0xff] }
 0x14e   :  { %1566 = vmatpush3.bf16.msra.mxu1 %v1565_v38 }
 0x14f   :  { %1568 = vmatprep.subr.bf16.mxu1 %v1567_v44 }
 0x152   :  { %1570 = vmatpush3.bf16.msra.mxu1 %v1569_v48 }
 0x153   :  { %1572 = vmatprep.subr.bf16.mxu1 %v1571_v54 }
 0x156   :  { %1574 = vmatpush3.bf16.msra.mxu1 %v1573_v60 }
 0x1f4   :  { %v266_v3 = vpop.f32.mrb[0].mxu1 }
 0x1f5   :  { %v1303_v4 = vpop.f32.mrb[1].mxu1  ;;  %v340_v8 = vmul.f32 0.001953125, %v266_v3  ;;  %v568_v3 = vld [vmem:[%s2208_s2 + $0xe8] sm:$0xff] }
 0x1f6   :  { %v1575_v4 = vpack.c.bf16 %v568_v3, %v567_v1 }
 0x1f7   :  { %v342_v11 = vmul.f32 %v340_v8, %v340_v8 }
 0x1f8   :  { %1576 = vmatprep.subr.bf16.mxu1 %v1575_v4 }
 0x214   :  { %v336_v10 = vpop.f32.mrb[2].mxu1 }
 0x215   :  { %v341_v12 = vmul.f32 0.001953125, %v336_v10  ;;  %v1338_v13 = vpop.f32.mrb[3].mxu1  ;;  %v552_v10 = vld [vmem:[%s2208_s2 + $0x68] sm:$0xff] }
 0x216   :  { %v584_v13 = vld [vmem:[%s2208_s2 + $0x168] sm:$0xff] }
 0x217   :  { %v343_v14 = vsub.f32 %v341_v12, %v342_v11  ;;  %v583_v11 = vld [vmem:[%s2208_s2 + $0x160] sm:$0xff] }
 0x219   :  { %v345_v16 = vadd.f32 1e-05, %v343_v14  ;;  %v1607_v14 = vpack.c.bf16 %v584_v13, %v583_v11 }
 0x21b   :  { %1666 = vrsqrt.f32 %v345_v16  ;;  %v569_v16 = vld [vmem:[%s2208_s2 + $0xf0] sm:$0xff] }
 0x225   :  { %v1667_v23 = vpop.eup %1666 }
 0x226   :  { %v347_v24 = vmul.f32 %v1667_v23, %v344_v17  ;;  %v570_v17 = vld [vmem:[%s2208_s2 + $0xf8] sm:$0xff] }
 0x227   :  { %v1579_v19 = vpack.c.bf16 %v570_v17, %v569_v16  ;;  %v554_v23 = vld [vmem:[%s2208_s2 + $0x78] sm:$0xff] }
 0x228   :  { %1342 = vmatmul.mubr.msk.f32.vlgmr.msra.gmra.mrb[8].mxu0 %vm352_vm2, %v347_v24  ;;  %v349_v29 = vmul.f32 %v347_v24, %v340_v8  ;;  %v551_v8 = vld [vmem:[%s2208_s2 + $0x60] sm:$0xff]  ;;  %v585_v24 = vld [vmem:[%s2208_s2 + $0x170] sm:$0xff] }
 0x229   :  { %1345 = vmatpush3.msra.mxu0 %v1965_v39  ;;  %1346 = vmatprep.mubr.msk.f32.mxu0 %vm1671_vm1, %v1672_v6  ;;  %v1577_v12 = vpack.c.bf16 %v552_v10, %v551_v8 }
 0x22a   :  { %v350_v30 = vsub.f32 %v348_v26, %v349_v29  ;;  %1584 = vmatprep.subr.bf16.mxu0 %v1583_v25  ;;  %v1581_v26 = vpack.c.bf16 %v554_v23, %v553_v18  ;;  %v500_v29 = vshrl.u32 %v499_v28, 7 }
 0x22b   :  { %1578 = vmatpush3.bf16.msra.mxu1 %v1577_v12 }
 0x22c   :  { %1347 = vmatmul.mubr.msk.f32.vlgmr.msra.gmra.mrb[10].mxu0 %vm352_vm2, %v350_v30  ;;  %1580 = vmatprep.subr.bf16.mxu1 %v1579_v19  ;;  %v2126_v30 = vsub.s32 0, %v500_v29 }
 0x22d   :  { %1586 = vmatpush3.bf16.msra.mxu0 %v1583_v25  ;;  %v586_v25 = vld [vmem:[%s2208_s2 + $0x178] sm:$0xff] }
 0x22e   :  { %1588 = vmatprep.subr.bf16.mxu0 %v1587_v31  ;;  %v1611_v27 = vpack.c.bf16 %v586_v25, %v585_v24 }
 0x22f   :  { %1582 = vmatpush3.bf16.msra.mxu1 %v1581_v26 }
 0x230   :  { %1615 = vmatprep.subr.bf16.mxu1 %v1670_v0 }
 0x231   :  { %1590 = vmatpush3.bf16.msra.mxu0 %v1587_v31 }
 0x232   :  { %1592 = vmatprep.subr.bf16.mxu0 %v1591_v34 }
 0x235   :  { %1594 = vmatpush3.bf16.msra.mxu0 %v1591_v34 }
 0x236   :  { %1596 = vmatprep.subr.bf16.mxu0 %v1595_v41 }
 0x239   :  { %1598 = vmatpush3.bf16.msra.mxu0 %v1595_v41 }
 0x23a   :  { %1600 = vmatprep.subr.bf16.mxu0 %v1599_v50 }
 0x23d   :  { %1602 = vmatpush3.bf16.msra.mxu0 %v1599_v50 }
 0x23e   :  { %1604 = vmatprep.subr.bf16.mxu0 %v1603_v63 }
 0x241   :  { %1606 = vmatpush3.bf16.msra.mxu0 %v1603_v63 }
 0x242   :  { %1608 = vmatprep.subr.bf16.mxu0 %v1607_v14 }
 0x245   :  { %1610 = vmatpush3.bf16.msra.mxu0 %v1607_v14 }
 0x246   :  { %1612 = vmatprep.subr.bf16.mxu0 %v1611_v27 }
 0x249   :  { %1614 = vmatpush3.bf16.msra.mxu0 %v1611_v27 }
 0x24a   :  { %1639 = vmatprep.subr.bf16.mxu0 %v1670_v0 }
 0x2fb   :  { %v422_v31 = vpop.f32.mrb[8].mxu0 }
 0x2fc   :  { %v502_v32 = vrot.slane %v422_v31, %v2126_v30  ;;  %v1343_v33 = vpop.f32.mrb[9].mxu0 }
 0x2fe   :  { %v504_v34 = vmul.f32 %v502_v32, %v1927_v9  ;;  %v505_v35 = vmul.f32 %v502_v32, %v1935_v15  ;;  %v506_v36 = vmul.f32 %v502_v32, %v1940_v22  ;;  %v503_v37 = vmul.f32 %v502_v32, %v1925_v7 }
 0x2ff   :  { %v495_v38 = vpop.f32.mrb[10].mxu0 }
 0x300   :  { %v510_v40 = vrot.slane %v495_v38, %v2126_v30  ;;  %v1348_v41 = vpop.f32.mrb[11].mxu0 }
 0x302   :  { %v512_v42 = vadd.f32 %v510_v40, %v504_v34  ;;  %v513_v43 = vadd.f32 %v510_v40, %v505_v35  ;;  %v514_v44 = vadd.f32 %v510_v40, %v506_v36  ;;  %v511_v45 = vadd.f32 %v510_v40, %v503_v37 }
 0x304   :  { %v516_v46 = vmax.f32 %v512_v42, 0.0  ;;  %v517_v47 = vmax.f32 %v513_v43, 0.0  ;;  %v518_v48 = vmax.f32 %v514_v44, 0.0  ;;  %v515_v49 = vmax.f32 %v511_v45, 0.0 }
 0x306   :  { %528 = vst [vmem:[#allocation2 + $0x18] sm:$0xff] %v516_v46  ;;  %529 = vst [vmem:[#allocation2 + $0x40] sm:$0xff] %v517_v47  ;;  %651 = vmatprep.mubr.f32.mxu1 %v515_v49 }
 0x307   :  { %530 = vst [vmem:[#allocation2 + $0x48] sm:$0xff] %v518_v48  ;;  %527 = vst [vmem:[#allocation2 + $0x10] sm:$0xff] %v515_v49 }
 0x30d   :  { %v536_v7 = vld [vmem:[#allocation2 + $0x19] sm:$0xff] }
 0x30e   :  { %v531_v9 = vld [vmem:[#allocation2 + $0xf] sm:$0xff]  ;;  %v537_v22 = vld [vmem:[#allocation2 + $0x41] sm:$0xff]  ;;  %v532_v50 = vld [vmem:[#allocation2 + $0x17] sm:$0xff] }
 0x30f   :  { %v535_v15 = vld [vmem:[#allocation2 + $0x11] sm:$0xff]  ;;  %652 = vmatmul.mubr.f32.vlgmr.msra.gmra.mrb[4].mxu1 %v531_v9  ;;  %v538_v51 = vld [vmem:[#allocation2 + $0x49] sm:$0xff]  ;;  %v533_v52 = vld [vmem:[#allocation2 + $0x3f] sm:$0xff] }
 0x310   :  { %1381 = vmatprep.mubr.f32.mxu0 %v535_v15  ;;  %656 = vmatprep.mubr.f32.mxu1 %v516_v46 }
 0x311   :  { %1382 = vmatmul.mubr.f32.vlgmr.msra.gmra.mrb[12].mxu0 %v536_v7  ;;  %1617 = vmatpush3.bf16.msra.mxu1 %v1774_v20 }
 0x312   :  { %1384 = vmatprep.mubr.f32.mxu0 %v537_v22  ;;  %1641 = vmatpush3.bf16.msra.mxu0 %v1774_v20  ;;  %v534_v20 = vld [vmem:[#allocation2 + $0x47] sm:$0xff] }
 0x313   :  { %1618 = vmatprep.subr.bf16.mxu1 %v1670_v0  ;;  %657 = vmatmul.mubr.f32.gmra.mrb[6].mxu1 %v532_v50 }
 0x314   :  { %1642 = vmatprep.subr.bf16.mxu0 %v1670_v0  ;;  %661 = vmatprep.mubr.f32.mxu1 %v517_v47 }
 0x315   :  { %1385 = vmatmul.mubr.f32.gmra.mrb[14].mxu0 %v538_v51  ;;  %1620 = vmatpush3.bf16.msra.mxu1 %v1777_v21 }
 0x316   :  { %1454 = vmatprep.mubr.msk.f32.mxu0 %vm1671_vm1, %v1672_v6  ;;  %1644 = vmatpush3.bf16.msra.mxu0 %v1777_v21 }
 0x317   :  { %1621 = vmatprep.subr.bf16.mxu1 %v1670_v0  ;;  %662 = vmatmul.mubr.f32.gmra.mrb[8].mxu1 %v533_v52 }
 0x318   :  { %1645 = vmatprep.subr.bf16.mxu0 %v1670_v0  ;;  %666 = vmatprep.mubr.f32.mxu1 %v518_v48  ;;  %v939_v48 = vld [vmem:[%s2211_s5] sm:$0x1] }
 0x319   :  { %1623 = vmatpush3.bf16.msra.mxu1 %v1862_v53 }
 0x31a   :  { %1647 = vmatpush3.bf16.msra.mxu0 %v1862_v53  ;;  %1624 = vmatprep.subr.bf16.mxu1 %v1670_v0 }
 0x31b   :  { %667 = vmatmul.mubr.f32.gmra.mrb[10].mxu1 %v534_v20  ;;  %1648 = vmatprep.subr.bf16.mxu0 %v1670_v0 }
 0x31c   :  { %1419 = vmatprep.mubr.msk.f32.mxu1 %vm1671_vm1, %v1672_v6 }
 0x31d   :  { %1626 = vmatpush3.bf16.msra.mxu1 %v1872_v56 }
 0x31e   :  { %1650 = vmatpush3.bf16.msra.mxu0 %v1872_v56  ;;  %1627 = vmatprep.subr.bf16.mxu1 %v1670_v0 }
 0x31f   :  { %1651 = vmatprep.subr.bf16.mxu0 %v1670_v0 }
 0x321   :  { %1629 = vmatpush3.bf16.msra.mxu1 %v1882_v59 }
 0x322   :  { %1653 = vmatpush3.bf16.msra.mxu0 %v1882_v59  ;;  %1630 = vmatprep.subr.bf16.mxu1 %v1670_v0 }
 0x323   :  { %1654 = vmatprep.subr.bf16.mxu0 %v1670_v0 }
 0x325   :  { %1632 = vmatpush3.bf16.msra.mxu1 %v1892_v62 }
 0x326   :  { %1656 = vmatpush3.bf16.msra.mxu0 %v1892_v62  ;;  %1633 = vmatprep.subr.bf16.mxu1 %v1670_v0 }
 0x327   :  { %1657 = vmatprep.subr.bf16.mxu0 %v1670_v0 }
 0x329   :  { %1635 = vmatpush3.bf16.msra.mxu1 %v1902_v2 }
 0x32a   :  { %1659 = vmatpush3.bf16.msra.mxu0 %v1902_v2  ;;  %1636 = vmatprep.subr.bf16.mxu1 %v1670_v0 }
 0x32b   :  { %1660 = vmatprep.subr.bf16.mxu0 %v1670_v0 }
 0x32d   :  { %1638 = vmatpush3.bf16.msra.mxu1 %v1912_v5 }
 0x32e   :  { %1662 = vmatpush3.bf16.msra.mxu0 %v1912_v5  ;;  %1457 = vmatprep.subr.mxu1 %v1672_v6 }
 0x32f   :  { %1462 = vmatprep.subr.mxu0 %v1672_v6 }
 0x3e2   :  { %v1199_v21 = vpop.f32.mrb[4].mxu1 }
 0x3e3   :  { %v1200_v53 = vpop.f32.mrb[5].mxu1 }
 0x3e4   :  { %v1383_v56 = vpop.f32.mrb[12].mxu0  ;;  %v1201_v59 = vadd.f32 %v1200_v53, %v1199_v21 }
 0x3e5   :  { %v738_v62 = vpop.f32.mrb[13].mxu0 }
 0x3e6   :  { %v2170_v54 = vadd.f32 %v1201_v59, %v738_v62  ;;  %v1202_v2 = vpop.f32.mrb[6].mxu1 }
 0x3e7   :  { %v1203_v55 = vpop.f32.mrb[7].mxu1 }
 0x3e8   :  { %v1386_v57 = vpop.f32.mrb[14].mxu0  ;;  %v1204_v58 = vadd.f32 %v1203_v55, %v1202_v2  ;;  %v766_v10 = vmul.f32 %v2170_v54, %v2170_v54 }
 0x3e9   :  { %v748_v0 = vpop.f32.mrb[15].mxu0 }
 0x3ea   :  { %v744_v60 = vadd.f32 %v1383_v56, %v1204_v58  ;;  %v1205_v61 = vpop.f32.mrb[8].mxu1 }
 0x3eb   :  { %v1206_v63 = vpop.f32.mrb[9].mxu1 }
 0x3ec   :  { %v1207_v5 = vadd.f32 %v1206_v63, %v1205_v61  ;;  %v767_v1 = vmul.f32 %v744_v60, %v744_v60  ;;  %v757_v11 = vadd.f32 %v744_v60, %v2170_v54 }
 0x3ee   :  { %v749_v3 = vadd.f32 %v1207_v5, %v748_v0  ;;  %v1208_v4 = vpop.f32.mrb[10].mxu1  ;;  %v770_v14 = vadd.f32 %v767_v1, %v766_v10 }
 0x3ef   :  { %v1209_v8 = vpop.f32.mrb[11].mxu1 }
 0x3f0   :  { %v768_v12 = vmul.f32 %v749_v3, %v749_v3  ;;  %v1210_v13 = vadd.f32 %v1209_v8, %v1208_v4  ;;  %v758_v16 = vadd.f32 %v757_v11, %v749_v3 }
 0x3f2   :  { %v754_v17 = vadd.f32 %v1386_v57, %v1210_v13  ;;  %v771_v18 = vadd.f32 %v770_v14, %v768_v12 }
 0x3f4   :  { %v759_v19 = vadd.f32 %v758_v16, %v754_v17  ;;  %v769_v23 = vmul.f32 %v754_v17, %v754_v17 }
 0x3f6   :  { %v760_v24 = vrot.slane %v759_v19, 4  ;;  %v772_v25 = vadd.f32 %v771_v18, %v769_v23 }
 0x3f8   :  { %v761_v26 = vadd.f32 %v760_v24, %v759_v19  ;;  %v773_v27 = vrot.slane %v772_v25, 4 }
 0x3fa   :  { %v762_v28 = vrot.slane %v761_v26, 2  ;;  %v774_v29 = vadd.f32 %v773_v27, %v772_v25 }
 0x3fc   :  { %v763_v31 = vadd.f32 %v762_v28, %v761_v26  ;;  %v775_v32 = vrot.slane %v774_v29, 2 }
 0x3fe   :  { %v764_v33 = vrot.slane %v763_v31, 1  ;;  %v776_v34 = vadd.f32 %v775_v32, %v774_v29 }
 0x400   :  { %v765_v35 = vadd.f32 %v764_v33, %v763_v31  ;;  %v777_v36 = vrot.slane %v776_v34, 1 }
 0x402   :  { %1420 = vmatmul.mubr.f32.vlgmr.msra.gmra.mrb[12].mxu1 %v765_v35  ;;  %v778_v37 = vadd.f32 %v777_v36, %v776_v34 }
 0x403   :  { %1458 = vmatpush3.msra.mxu1 %v1965_v39  ;;  %1459 = vmatprep.mubr.msk.f32.mxu1 %vm1671_vm1, %v1672_v6 }
 0x404   :  { %1455 = vmatmul.mubr.f32.vlgmr.msra.gmra.mrb[16].mxu0 %v778_v37 }
 0x405   :  { %1463 = vmatpush3.msra.mxu0 %v1965_v39  ;;  %1464 = vmatprep.mubr.msk.f32.mxu0 %vm1671_vm1, %v1672_v6  ;;  %v943_v6 = vld [vmem:[%s2212_s6] sm:$0x1] }
 0x4d5   :  { %v861_v38 = vpop.f32.mrb[12].mxu1 }
 0x4d6   :  { %v935_v40 = vmul.f32 0.001953125, %v861_v38  ;;  %v1421_v41 = vpop.f32.mrb[13].mxu1 }
 0x4d7   :  { %v931_v42 = vpop.f32.mrb[16].mxu0 }
 0x4d8   :  { %v937_v43 = vmul.f32 %v935_v40, %v935_v40  ;;  %v936_v44 = vmul.f32 0.001953125, %v931_v42  ;;  %v1456_v45 = vpop.f32.mrb[17].mxu0 }
 0x4da   :  { %v938_v46 = vsub.f32 %v936_v44, %v937_v43 }
 0x4dc   :  { %v940_v47 = vadd.f32 1e-05, %v938_v46 }
 0x4de   :  { %1668 = vrsqrt.f32 %v940_v47 }
 0x4e8   :  { %v1669_v49 = vpop.eup %1668 }
 0x4e9   :  { %v942_v9 = vmul.f32 %v1669_v49, %v939_v48 }
 0x4eb   :  { %1460 = vmatmul.mubr.msk.f32.vlgmr.msra.gmra.mrb[14].mxu1 %vm352_vm2, %v942_v9  ;;  %v944_v39 = vmul.f32 %v942_v9, %v935_v40 }
 0x4ed   :  { %v945_v15 = vsub.f32 %v943_v6, %v944_v39 }
 0x4ef   :  { %1465 = vmatmul.mubr.msk.f32.vlgmr.msra.gmra.mrb[18].mxu0 %vm352_vm2, %v945_v15 }
 0x5be   :  { %v1016_v7 = vpop.f32.mrb[14].mxu1 }
 0x5bf   :  { %v1096_v22 = vrot.slane %v1016_v7, %v2126_v30  ;;  %v1461_v50 = vpop.f32.mrb[15].mxu1 }
 0x5c1   :  { %v1097_v51 = vmul.f32 %v1096_v22, %v2170_v54  ;;  %v1098_v20 = vmul.f32 %v1096_v22, %v744_v60  ;;  %v1099_v21 = vmul.f32 %v1096_v22, %v749_v3  ;;  %v1100_v53 = vmul.f32 %v1096_v22, %v754_v17 }
 0x5c2   :  { %v1089_v52 = vpop.f32.mrb[18].mxu0 }
 0x5c3   :  { %v1104_v56 = vrot.slane %v1089_v52, %v2126_v30  ;;  %v1466_v59 = vpop.f32.mrb[19].mxu0 }
 0x5c5   :  { %v1105_v62 = vadd.f32 %v1104_v56, %v1097_v51  ;;  %v1106_v2 = vadd.f32 %v1104_v56, %v1098_v20  ;;  %v1107_v55 = vadd.f32 %v1104_v56, %v1099_v21  ;;  %v1108_v57 = vadd.f32 %v1104_v56, %v1100_v53 }
 0x5c7   :  { %v1109_v58 = vmax.f32 %v1105_v62, 0.0  ;;  %v1110_v0 = vmax.f32 %v1106_v2, 0.0  ;;  %v1111_v61 = vmax.f32 %v1107_v55, 0.0  ;;  %v1112_v63 = vmax.f32 %v1108_v57, 0.0 }
 0x5c9   :  { %1113 = vst [vmem:[%s2213_s9] sm:$0xff] %v1109_v58  ;;  %1114 = vst [vmem:[%s2213_s9 + $0x8] sm:$0xff] %v1110_v0 }
 0x5ca   :  { %1115 = vst [vmem:[%s2213_s9 + $0x10] sm:$0xff] %v1111_v61  ;;  %1116 = vst [vmem:[%s2213_s9 + $0x18] sm:$0xff] %v1112_v63 }

</bundles_post_ra>
